<compile_context>
chip_gen: v6e
topology: v6e:2x2x1
jax: 0.10.0
libtpu: 0.0.40
codegen_flags: <defaults>
</compile_context>

<pallas_src>
import jax
import jax.numpy as jnp
from jax.experimental import pallas as pl
from jax.experimental.pallas import tpu as pltpu

_LANES = 128


def _cdiv(a, b):
    return -(-a // b)


def _round_up(a, m):
    return _cdiv(a, m) * m


def _make_kernel(quantiles):
    """Builds a kernel with the quantiles as compile-time scalar constants."""
    qvals = [float(q) for q in quantiles]
    Q = len(qvals)

    def kernel(yp_ref, yt_ref, out_ref, acc_ref):
        # grid = (core_split, chunk); acc_ref is a per-core (tile_rows, 128)
        # f32 accumulator that lives across the inner (chunk) axis.
        c = pl.program_id(1)

        @pl.when(c == 0)
        def _init():
            acc_ref[...] = jnp.zeros_like(acc_ref)

        yt = yt_ref[...].astype(jnp.float32)            # (tile_rows, 128)
        total = None
        for k in range(Q):                              # unrolled; q_k immediate
            e = yt - yp_ref[k].astype(jnp.float32)      # (tile_rows, 128), pure VPU
            # max(q*e, (q-1)*e) == q*e - min(e, 0): one mul + one min + one sub.
            pin = qvals[k] * e - jnp.minimum(e, 0.0)
            total = pin if total is None else total + pin
        acc_ref[...] += total                           # single RMW per step

        @pl.when(c == pl.num_programs(1) - 1)
        def _finalize():
            # One cross-lane/cross-sublane reduce per core, once, at the end.
            out_ref[0, 0] = jnp.sum(acc_ref[...])

    return kernel


def quantile_loss(y_pred, y_true, quantiles, *, max_tile_rows=2048, core_splits=1):
    """y_pred: (B, F, Q), y_true: (B, F, 1), quantiles: python list of length Q.

    core_splits: set to 2 on v7x (2 TensorCores, CORE_PARALLEL); keep 1 on
    single-TensorCore chips (v5e/v6e) to avoid extra serial grid steps.
    """
    B, F, Q = y_pred.shape
    assert y_true.shape == (B, F, 1)
    assert Q == len(quantiles)
    N = B * F

    # ---- tile / grid sizing --------------------------------------------------
    # rows of 128 lanes needed; balance tile_rows against the chunk count so the
    # zero-padded tail is at most a few hundred rows, and small problems run as
    # a single grid step.
    R = _cdiv(N, _LANES)
    rows_per_core = _cdiv(R, core_splits)
    chunks = _cdiv(rows_per_core, max_tile_rows)
    tile_rows = _round_up(_cdiv(rows_per_core, chunks), 8)
    R_pad = core_splits * chunks * tile_rows
    N_pad = R_pad * _LANES

    # ---- layout: lane-dense, sublane-dense 3-D views -------------------------
    # y_pred: (B,F,Q) -> (N,Q) [free] -> pad rows [folds into the transpose copy]
    #         -> (Q, N_pad) [the one required layout copy] -> (Q, R_pad, 128) [free]
    yp2 = y_pred.reshape(N, Q)
    if N_pad != N:
        yp2 = jnp.pad(yp2, ((0, N_pad - N), (0, 0)))     # zeros contribute 0 loss
    yp3 = yp2.T.reshape(Q, R_pad, _LANES)

    yt1 = y_true.reshape(N)
    if N_pad != N:
        yt1 = jnp.pad(yt1, (0, N_pad - N))
    yt2 = yt1.reshape(R_pad, _LANES)

    # ---- VMEM budget (double-buffered inputs + f32 accumulator), capped for v7x
    in_itemsize = jnp.dtype(y_pred.dtype).itemsize
    yt_itemsize = jnp.dtype(y_true.dtype).itemsize
    tile_bytes = (Q * in_itemsize + yt_itemsize) * tile_rows * _LANES
    vmem_needed = 2 * tile_bytes + tile_rows * _LANES * 4
    vmem_limit = int(min(max(vmem_needed + (8 << 20), 32 << 20), 48 << 20))

    if core_splits > 1:
        dim_sem = (pltpu.CORE_PARALLEL, "arbitrary")     # real cross-TC split (v7x)
    else:
        dim_sem = ("arbitrary", "arbitrary")

    kernel = _make_kernel(quantiles)

    partials = pl.pallas_call(
        kernel,
        out_shape=jax.ShapeDtypeStruct((core_splits, 1), jnp.float32),
        grid_spec=pltpu.PrefetchScalarGridSpec(
            num_scalar_prefetch=0,
            grid=(core_splits, chunks),
            in_specs=[
                pl.BlockSpec((Q, tile_rows, _LANES),
                             lambda p, c: (0, p * chunks + c, 0)),   # y_pred
                pl.BlockSpec((tile_rows, _LANES),
                             lambda p, c: (p * chunks + c, 0)),      # y_true
            ],
            out_specs=pl.BlockSpec((1, 1), lambda p, c: (p, 0),
                                   memory_space=pltpu.MemorySpace.SMEM),
            scratch_shapes=[pltpu.VMEM((tile_rows, _LANES), jnp.float32)],
        ),
        compiler_params=pltpu.CompilerParams(
            dimension_semantics=dim_sem,
            vmem_limit_bytes=vmem_limit),
    )(yp3, yt2)

    # Combine per-core partial sums; single scalar normalization outside.
    return jnp.sum(partials) * (1.0 / float(N * Q))


def quantile_loss_ref(y_pred, y_true, quantiles):
    # Pure-JAX reference mirroring the PyTorch loop.
    losses = []
    for i, q in enumerate(quantiles):
        e = y_true.astype(jnp.float32) - y_pred[:, :, i:i + 1].astype(jnp.float32)
        losses.append(jnp.maximum(q * e, (q - 1.0) * e).mean())
    return jnp.stack(losses).mean()


if __name__ == "__main__":
    key = jax.random.PRNGKey(0)
    quantiles = [0.1, 0.5, 0.9]
    Q = len(quantiles)

    k1, k2, k3, k4 = jax.random.split(key, 4)

    # Case 1: small shape matching the module's typical use (single-step fast path).
    B, F = 2, 8
    y_pred = jax.random.normal(k1, (B, F, Q), dtype=jnp.float32)
    y_true = jax.random.normal(k2, (B, F, 1), dtype=jnp.float32)
    loss = jax.block_until_ready(quantile_loss(y_pred, y_true, quantiles))
    ref = quantile_loss_ref(y_pred, y_true, quantiles)
    assert jnp.allclose(loss, ref, rtol=1e-5, atol=1e-6), (loss, ref)

    # Case 2: non-multiple-of-128 N with remainder padding (still one grid step).
    B2, F2 = 5, 1000
    y_pred2 = jax.random.normal(k3, (B2, F2, Q), dtype=jnp.float32)
    y_true2 = jax.random.normal(k4, (B2, F2, 1), dtype=jnp.float32)
    loss2 = jax.block_until_ready(quantile_loss(y_pred2, y_true2, quantiles))
    ref2 = quantile_loss_ref(y_pred2, y_true2, quantiles)
    assert jnp.allclose(loss2, ref2, rtol=1e-5, atol=1e-6), (loss2, ref2)

    # Case 3: force multi-chunk accumulation on the same data (tiny tiles) to
    # exercise the accumulator init/finalize path across grid steps.
    loss3 = jax.block_until_ready(
        quantile_loss(y_pred2, y_true2, quantiles, max_tile_rows=8))
    assert jnp.allclose(loss3, ref2, rtol=1e-5, atol=1e-6), (loss3, ref2)

    # Case 4: bf16 inputs (cast to f32 in-kernel, f32 accumulation).
    y_pred4 = y_pred2.astype(jnp.bfloat16)
    y_true4 = y_true2.astype(jnp.bfloat16)
    loss4 = jax.block_until_ready(quantile_loss(y_pred4, y_true4, quantiles))
    ref4 = quantile_loss_ref(y_pred4, y_true4, quantiles)
    assert jnp.allclose(loss4, ref4, rtol=1e-4, atol=1e-5), (loss4, ref4)

    print("KERNEL_OK")
</pallas_src>

<mosaic_0001>
module attributes {stable_mosaic.version = 11 : i64} {
  func.func @kernel(%arg0: i32, %arg1: i32, %arg2: memref<3x8x128xf32, #tpu.memory_space<vmem>>, %arg3: memref<8x128xf32, #tpu.memory_space<vmem>>, %arg4: memref<1x1xf32, #tpu.memory_space<smem>>, %arg5: memref<8x128xf32, #tpu.memory_space<vmem>>) attributes {dimension_semantics = [#tpu.dimension_semantics<arbitrary>, #tpu.dimension_semantics<arbitrary>], iteration_bounds = array<i64: 1, 1>, scalar_prefetch = 0 : i64, scratch_operands = 1 : i64, tpu.core_type = #tpu.core_type<tc>, window_params = [{transform_indices = @transform_0, window_bounds = array<i64: 3, 8, 128>}, {transform_indices = @transform_1, window_bounds = array<i64: 8, 128>}, {transform_indices = @transform_2, window_bounds = array<i64: 1, 1>}]} {
    %c0_i32 = arith.constant 0 : i32
    %0 = arith.cmpi eq, %arg1, %c0_i32 : i32
    %1 = arith.extui %0 : i1 to i32
    %c0_i32_0 = arith.constant 0 : i32
    %2 = arith.cmpi ne, %1, %c0_i32_0 : i32
    scf.if %2 {
      %cst_20 = arith.constant 0.000000e+00 : f32
      %36 = vector.broadcast %cst_20 : f32 to vector<8x128xf32>
      %c0_21 = arith.constant 0 : index
      %c0_22 = arith.constant 0 : index
      %37 = vector.load %arg5[%c0_21, %c0_22] : memref<8x128xf32, #tpu.memory_space<vmem>>, vector<8x128xf32>
      tpu.vector_store %arg5[%c0_21, %c0_22], %36 {strides = array<i32>} : memref<8x128xf32, #tpu.memory_space<vmem>>, vector<8x128xf32>,
    } else {
    }
    %c0 = arith.constant 0 : index
    %c0_1 = arith.constant 0 : index
    %3 = vector.load %arg3[%c0, %c0_1] : memref<8x128xf32, #tpu.memory_space<vmem>>, vector<8x128xf32>
    %c0_2 = arith.constant 0 : index
    %c0_3 = arith.constant 0 : index
    %c0_4 = arith.constant 0 : index
    %4 = vector.load %arg2[%c0_2, %c0_3, %c0_4] : memref<3x8x128xf32, #tpu.memory_space<vmem>>, vector<1x8x128xf32>
    %5 = vector.shape_cast %4 : vector<1x8x128xf32> to vector<8x128xf32>
    %6 = arith.subf %3, %5 : vector<8x128xf32>
    %cst = arith.constant 1.000000e-01 : f32
    %7 = vector.broadcast %cst : f32 to vector<8x128xf32>
    %8 = arith.mulf %7, %6 : vector<8x128xf32>
    %cst_5 = arith.constant 0.000000e+00 : f32
    %9 = vector.broadcast %cst_5 : f32 to vector<8x128xf32>
    %10 = arith.minimumf %6, %9 : vector<8x128xf32>
    %11 = arith.subf %8, %10 : vector<8x128xf32>
    %c1 = arith.constant 1 : index
    %c0_6 = arith.constant 0 : index
    %c0_7 = arith.constant 0 : index
    %12 = vector.load %arg2[%c1, %c0_6, %c0_7] : memref<3x8x128xf32, #tpu.memory_space<vmem>>, vector<1x8x128xf32>
    %13 = vector.shape_cast %12 : vector<1x8x128xf32> to vector<8x128xf32>
    %14 = arith.subf %3, %13 : vector<8x128xf32>
    %cst_8 = arith.constant 5.000000e-01 : f32
    %15 = vector.broadcast %cst_8 : f32 to vector<8x128xf32>
    %16 = arith.mulf %15, %14 : vector<8x128xf32>
    %cst_9 = arith.constant 0.000000e+00 : f32
    %17 = vector.broadcast %cst_9 : f32 to vector<8x128xf32>
    %18 = arith.minimumf %14, %17 : vector<8x128xf32>
    %19 = arith.subf %16, %18 : vector<8x128xf32>
    %20 = arith.addf %11, %19 : vector<8x128xf32>
    %c2 = arith.constant 2 : index
    %c0_10 = arith.constant 0 : index
    %c0_11 = arith.constant 0 : index
    %21 = vector.load %arg2[%c2, %c0_10, %c0_11] : memref<3x8x128xf32, #tpu.memory_space<vmem>>, vector<1x8x128xf32>
    %22 = vector.shape_cast %21 : vector<1x8x128xf32> to vector<8x128xf32>
    %23 = arith.subf %3, %22 : vector<8x128xf32>
    %cst_12 = arith.constant 0.899999976 : f32
    %24 = vector.broadcast %cst_12 : f32 to vector<8x128xf32>
    %25 = arith.mulf %24, %23 : vector<8x128xf32>
    %cst_13 = arith.constant 0.000000e+00 : f32
    %26 = vector.broadcast %cst_13 : f32 to vector<8x128xf32>
    %27 = arith.minimumf %23, %26 : vector<8x128xf32>
    %28 = arith.subf %25, %27 : vector<8x128xf32>
    %29 = arith.addf %20, %28 : vector<8x128xf32>
    %c0_14 = arith.constant 0 : index
    %c0_15 = arith.constant 0 : index
    %30 = vector.load %arg5[%c0_14, %c0_15] : memref<8x128xf32, #tpu.memory_space<vmem>>, vector<8x128xf32>
    %31 = arith.addf %30, %29 : vector<8x128xf32>
    %c0_16 = arith.constant 0 : index
    %c0_17 = arith.constant 0 : index
    %32 = vector.load %arg5[%c0_16, %c0_17] : memref<8x128xf32, #tpu.memory_space<vmem>>, vector<8x128xf32>
    tpu.vector_store %arg5[%c0_16, %c0_17], %31 {strides = array<i32>} : memref<8x128xf32, #tpu.memory_space<vmem>>, vector<8x128xf32>,
    %c0_i32_18 = arith.constant 0 : i32
    %33 = arith.cmpi eq, %arg1, %c0_i32_18 : i32
    %34 = arith.extui %33 : i1 to i32
    %c0_i32_19 = arith.constant 0 : i32
    %35 = arith.cmpi ne, %34, %c0_i32_19 : i32
    scf.if %35 {
      %c0_20 = arith.constant 0 : index
      %c0_21 = arith.constant 0 : index
      %36 = vector.load %arg5[%c0_20, %c0_21] : memref<8x128xf32, #tpu.memory_space<vmem>>, vector<8x128xf32>
      %37 = vector.shape_cast %36 : vector<8x128xf32> to vector<1x8x128xf32>
      %cst_22 = arith.constant dense<0.000000e+00> : vector<1xf32>
      %38 = vector.multi_reduction <add>, %37, %cst_22 [1, 2] : vector<1x8x128xf32> to vector<1xf32>
      %39 = vector.shape_cast %38 : vector<1xf32> to vector<1x1x1xf32>
      %40 = vector.extract %39[0, 0, 0] : f32 from vector<1x1x1xf32>
      %c0_23 = arith.constant 0 : index
      %c0_24 = arith.constant 0 : index
      %41 = memref.load %arg4[%c0_23, %c0_24] : memref<1x1xf32, #tpu.memory_space<smem>>
      memref.store %40, %arg4[%c0_23, %c0_24] : memref<1x1xf32, #tpu.memory_space<smem>>
    } else {
    }
    return
  }
  func.func @transform_0(%arg0: i32, %arg1: i32) -> (i32, i32, i32) {
    %c1_i32 = arith.constant 1 : i32
    %0 = arith.muli %arg0, %c1_i32 : i32
    %1 = arith.addi %0, %arg1 : i32
    %c0_i32 = arith.constant 0 : i32
    %c0_i32_0 = arith.constant 0 : i32
    %c0_i32_1 = arith.constant 0 : i32
    return %c0_i32, %1, %c0_i32_0 : i32, i32, i32
  }
  func.func @transform_1(%arg0: i32, %arg1: i32) -> (i32, i32) {
    %c1_i32 = arith.constant 1 : i32
    %0 = arith.muli %arg0, %c1_i32 : i32
    %1 = arith.addi %0, %arg1 : i32
    %c0_i32 = arith.constant 0 : i32
    %c0_i32_0 = arith.constant 0 : i32
    return %1, %c0_i32 : i32, i32
  }
  func.func @transform_2(%arg0: i32, %arg1: i32) -> (i32, i32) {
    %c0_i32 = arith.constant 0 : i32
    %c0_i32_0 = arith.constant 0 : i32
    return %arg0, %c0_i32 : i32, i32
  }
}

</mosaic_0001>

<bundles_post_ra>
// kernel: tpu_custom_call.1
= control target key start
LH: loop header
LB: loop body
LE: loop exit
PB: predicated region body
PF: predicated region fallthrough
CT: control target
= control target key end

     0   :  { %7 = vsyncpa [#allocation4], 0  ;;  %s194_s0 = inlined_call_operand.hbm [shape: f32[3,8,128], index: 0, kind: input, shape index: {}]   ;;  %s195_s1 = inlined_call_operand.hbm [shape: f32[8,128], index: 1, kind: input, shape index: {}]   ;;  %s196_s2 = inlined_call_operand.hbm [shape: f32[1,1], index: 2, kind: output, shape index: {}]  }
   0x1   :  { %8 = vsyncpa [#allocation7], 0 }
   0x2   :  { %9 = vsyncpa [#allocation5], 0  ;;  %s165_s9 = smov [#allocation3]  }
   0x3   :  { %s18_s10 = sshll.u32 %s165_s9, 4  ;;  %s19_s10 = int_to_ptr.vmem [resolvable:$true] %s18_s10 }
   0x4   :  { %s119_s11 = scalar_lea.vmem %s19_s10, 384  ;;  %p124_p1 = scmp.lt.s32.totalorder %s19_s10, %s19_s10 }
   0x5   :  { %p120_p0 = scmp.ne.s32.totalorder %s19_s10, %s119_s11  ;;  %p125_p2 = scmp.lt.s32.totalorder %s119_s11, %s119_s11 }
   0x7   :  { %p126_p3 = por %p125_p2, %p124_p1 }
   0x9   :  { %p127_p4 = pnand %p126_p3, %p120_p0 }
   0xb   :  { %130 = shalt.err (!%p127_p4)
}
   0xc   :  { %s166_s12 = smov 128   ;;  %s167_s13 = smov 8  }
   0xd   :  { %24 = dma.hbm_to_vmem [thread:$0]  %s194_s0, 384, %s19_s10, [#allocation4], %s166_s12, %s166_s12, %s167_s13  }
   0xe   :  { %s168_s16 = smov [#allocation6]  }
   0xf   :  { %s34_s17 = sshll.u32 %s168_s16, 4  ;;  %s35_s17 = int_to_ptr.vmem [resolvable:$true] %s34_s17 }
  0x10   :  { %s139_s18 = scalar_lea.vmem %s35_s17, 128  ;;  %p144_p6 = scmp.lt.s32.totalorder %s35_s17, %s35_s17 }
  0x11   :  { %p140_p5 = scmp.ne.s32.totalorder %s35_s17, %s139_s18  ;;  %p145_p7 = scmp.lt.s32.totalorder %s139_s18, %s139_s18 }
  0x13   :  { %p146_p8 = por %p145_p7, %p144_p6 }
  0x15   :  { %p147_p9 = pnand %p146_p8, %p140_p5 }
  0x17   :  { %150 = shalt.err (!%p147_p9)
}
  0x18   :  { %37 = dma.hbm_to_vmem [thread:$0]  %s195_s1, 128, %s35_s17, [#allocation7]  }
  0x19   :  { %159 = dma.done.wait [#allocation4], 384  }
  0x1a   :  { %160 = vsyncadd [#allocation4], 4294966912 }
  0x1b   :  { %161 = dma.done.wait [#allocation7], 128  }
  0x1c   :  { %162 = vsyncadd [#allocation7], 4294967168  ;;  %v51_v0 = vld [vmem:[#allocation6] sm:$0xff]  ;;  %v52_v1 = vld [vmem:[#allocation3] sm:$0xff]  ;;  %s169_s1 = smov [#allocation8]  }
  0x1d   :  { %v58_v2 = vld [vmem:[#allocation3 + $0x8] sm:$0xff]  ;;  %v53_v3 = vsub.f32 %v51_v0, %v52_v1  ;;  %v65_v5 = vld [vmem:[#allocation3 + $0x10] sm:$0xff] }
  0x1e   :  { %v59_v4 = vsub.f32 %v51_v0, %v58_v2  ;;  %v66_v6 = vsub.f32 %v51_v0, %v65_v5 }
  0x1f   :  { %v54_v7 = vmul.f32 0.1, %v53_v3  ;;  %v55_v8 = vmin.f32 %v53_v3, 0.0 }
  0x20   :  { %v60_v9 = vmul.f32 0.5, %v59_v4  ;;  %v61_v10 = vmin.f32 %v59_v4, 0.0  ;;  %v67_v11 = vmul.f32 0.9, %v66_v6  ;;  %v68_v12 = vmin.f32 %v66_v6, 0.0 }
  0x21   :  { %v56_v13 = vsub.f32 %v54_v7, %v55_v8 }
  0x22   :  { %v62_v14 = vsub.f32 %v60_v9, %v61_v10  ;;  %v69_v15 = vsub.f32 %v67_v11, %v68_v12 }
  0x24   :  { %v63_v16 = vadd.f32 %v62_v14, %v56_v13 }
  0x26   :  { %v70_v17 = vadd.f32 %v69_v15, %v63_v16 }
  0x28   :  { %78 = vadd.xlane.f32.xlu0 %v70_v17 }
  0xb1   :  { %v79_v18 = vpop.xlane.xlu0 %78 }
  0xb2   :  { %v80_v19 = vrot.slane %v79_v18, 4 }
  0xb4   :  { %v81_v20 = vadd.f32 %v80_v19, %v79_v18 }
  0xb6   :  { %v82_v21 = vrot.slane %v81_v20, 2 }
  0xb8   :  { %v83_v22 = vadd.f32 %v82_v21, %v81_v20 }
  0xba   :  { %v84_v23 = vrot.slane %v83_v22, 1 }
  0xbc   :  { %v85_v24 = vadd.f32 %v84_v23, %v83_v22 }
  0xbe   :  { %104 = vpush %v85_v24 }
  0xef   :  { %s105_s0 = spop %104 }
  0xf0   :  { %88 = sst [smem:[#allocation8]] %s105_s0 }
  0xf1   :  { %96 = dma.smem_to_hbm %s169_s1, 16, %s196_s2, [#allocation5]  }
  0xf2   :  { %163 = dma.done.wait [#allocation5], 16  }
  0xf3   :  { %164 = vsyncadd [#allocation5], 4294967280 }
  0xf4   :  { %100 = sfence }
  0xf5   :  { %101 = vsyncpa [#allocation4], 1 }
  0xf6   :  { %102 = vsyncpa [#allocation7], 1 }
  0xf7   :  { %103 = vsyncpa [#allocation5], 1 }

</bundles_post_ra>
